<compile_context>
chip_gen: v5e
topology: v5e:2x2
jax: 0.10.0
libtpu: 0.0.40
codegen_flags: <defaults>
</compile_context>

<pallas_src>
import jax
import jax.numpy as jnp
from jax import lax
from jax.experimental import pallas as pl
from jax.experimental.pallas import tpu as pltpu


def _round_up(x: int, m: int) -> int:
    return ((x + m - 1) // m) * m


def _pick_row_tile(n: int, max_tile: int = 4096) -> int:
    """Row tile for the batch axis.

    Invariants:
      * rt <= n (a block never exceeds the array; only the final grid block is
        partial, which is the standard well-supported clipping path),
      * rt is a multiple of 8 (sublane granule) or equal to n when n < 8,
      * for n > 256 rt is a multiple of 128 (fully unmasked lane-dense output
        stores) and leaves >= 2 grid steps (v7x megacore row sharding),
      * rt is capped at max_tile (amortizes the ~0.35 us/step overhead while
        keeping double-buffered VMEM usage tiny on every generation).
    """
    if n <= 8:
        return max(n, 1)
    if n <= 256:
        return (n // 8) * 8
    half = (n + 1) // 2
    rt = min(max_tile, _round_up(half, 128), (n // 128) * 128)
    return max(rt, 128)


def _make_mlp_kernel(n_layers: int):
    """Fused MLP kernel for `n_layers` linear layers.

    Ref order: x_ref, (w_0, b_0), ..., (w_{L-1}, b_{L-1}), o_ref.
    Hidden layers get Sigmoid, final layer is linear (matches the torch MLP
    used by ScorePolicy with activation=nn.Sigmoid).  The final layer is
    computed transposed so the output tile is lane-dense: (out_size, rt).
    """

    def kernel(*refs):
        x_ref = refs[0]
        o_ref = refs[-1]          # (out_size, rt)  -- leading grid dim squeezed
        wb = refs[1:-1]

        h = x_ref[...].astype(jnp.float32)            # (rt, f)

        # Hidden layers: standard (rt, din) @ (din, dout) + sigmoid (EUP).
        for li in range(n_layers - 1):
            w = wb[2 * li][...]                        # (din, dout)
            b = wb[2 * li + 1][...]                    # (1, dout)
            h = jnp.dot(h, w, preferred_element_type=jnp.float32) + b
            h = jax.nn.sigmoid(h)

        # Final layer, transposed: contract din of W (din,out) with din of
        # h (rt,din) -> (out, rt).  Rows land on lanes => unmasked vst.
        w_last = wb[2 * (n_layers - 1)][...]           # (din, out)
        b_last = wb[2 * (n_layers - 1) + 1][...]       # (out, 1)
        s = lax.dot_general(
            w_last, h,
            dimension_numbers=(((0,), (1,)), ((), ())),
            preferred_element_type=jnp.float32,
        )                                              # (out, rt)
        o_ref[...] = (s + b_last).astype(o_ref.dtype)

    return kernel


def score_policy_forward(obs, params, *, max_row_tile=4096):
    """ScorePolicy.forward(obs) = MLP(obs) as a single fused Pallas kernel.

    obs:    [N, feature_size] (any float dtype; cast to f32 in-kernel)
    params: list of (W, b) pairs; W: f32[in, out], b: f32[out]
    returns f32[N, out_size]
    """
    n, f = obs.shape
    n_layers = len(params)
    out_size = params[-1][0].shape[1]

    if n == 0:
        return jnp.zeros((0, out_size), jnp.float32)

    rt = _pick_row_tile(n, max_row_tile)
    num_blocks = pl.cdiv(n, rt)

    flat_args = [obs]
    in_specs = [pl.BlockSpec((rt, f), lambda i: (i, 0))]
    for li, (w, b) in enumerate(params):
        din, dout = w.shape
        flat_args.append(w.astype(jnp.float32))
        # Full-array blocks (block dims == array dims => exempt from the
        # (8,128) rule).  Constant index_map -> weights stay VMEM-resident
        # across all row tiles.
        in_specs.append(pl.BlockSpec((din, dout), lambda i: (0, 0)))
        if li == n_layers - 1:
            # Last-layer bias shaped (out, 1) so it broadcasts over the
            # transposed (out, rt) result without an in-kernel reshape.
            flat_args.append(b.astype(jnp.float32).reshape(dout, 1))
            in_specs.append(pl.BlockSpec((dout, 1), lambda i: (0, 0)))
        else:
            flat_args.append(b.astype(jnp.float32).reshape(1, dout))
            in_specs.append(pl.BlockSpec((1, dout), lambda i: (0, 0)))

    # Lane-dense output: one (out_size, rt) slab per grid step.
    out_spec = pl.BlockSpec((None, out_size, rt), lambda i: (i, 0, 0))

    out_p = pl.pallas_call(
        _make_mlp_kernel(n_layers),
        out_shape=jax.ShapeDtypeStruct((num_blocks, out_size, rt), jnp.float32),
        grid_spec=pltpu.PrefetchScalarGridSpec(
            num_scalar_prefetch=0,
            grid=(num_blocks,),
            in_specs=in_specs,
            out_specs=out_spec,
        ),
        compiler_params=pltpu.CompilerParams(
            dimension_semantics=("parallel",)),
    )(*flat_args)

    # (num_blocks, out, rt) -> (num_blocks*rt, out) -> drop garbage tail rows.
    scores = jnp.transpose(out_p, (0, 2, 1)).reshape(num_blocks * rt, out_size)
    return scores[:n]


def init_mlp_params(key, feature_size, out_size, hidden_sizes):
    """Deterministic PyTorch-Linear-style init: U(-1/sqrt(fan_in), 1/sqrt(fan_in))."""
    sizes = [feature_size] + list(hidden_sizes) + [out_size]
    params = []
    for li in range(len(sizes) - 1):
        fan_in, fan_out = sizes[li], sizes[li + 1]
        key, kw, kb = jax.random.split(key, 3)
        bound = 1.0 / jnp.sqrt(jnp.float32(fan_in))
        w = jax.random.uniform(kw, (fan_in, fan_out), jnp.float32, -bound, bound)
        b = jax.random.uniform(kb, (fan_out,), jnp.float32, -bound, bound)
        params.append((w, b))
    return params


def reference_mlp(obs, params):
    """Pure-JAX reference of the torch MLP forward (Sigmoid hidden, linear out)."""
    h = obs.astype(jnp.float32)
    for li, (w, b) in enumerate(params):
        h = h @ w + b
        if li < len(params) - 1:
            h = jax.nn.sigmoid(h)
    return h


if __name__ == "__main__":
    key = jax.random.PRNGKey(0)
    k_obs, k_obs2, k_obs3, k_p1, k_p2, k_p3 = jax.random.split(key, 6)

    feature_size = 13   # default cut feature size
    out_size = 1

    # Case 1: default ScorePolicy config -> hidden_sizes=(), a single Linear(13, 1).
    n_cuts = 64
    obs = jax.random.normal(k_obs, (n_cuts, feature_size), jnp.float32)
    params_default = init_mlp_params(k_p1, feature_size, out_size, ())
    scores_default = score_policy_forward(obs, params_default)
    jax.block_until_ready(scores_default)

    # Case 2: one hidden layer + Sigmoid activation.
    params_hidden = init_mlp_params(k_p2, feature_size, out_size, (32,))
    scores_hidden = score_policy_forward(obs, params_hidden)
    jax.block_until_ready(scores_hidden)

    # Case 3: two hidden layers, batch not a multiple of 8 (exercises the
    # partial-final-block clipping path, no wrapper pad).
    n_cuts2 = 50
    obs2 = jax.random.normal(k_obs2, (n_cuts2, feature_size), jnp.float32)
    params_deep = init_mlp_params(k_p3, feature_size, out_size, (32, 16))
    scores_deep = score_policy_forward(obs2, params_deep)
    jax.block_until_ready(scores_deep)

    # Case 4: batch large enough to get >=2 grid steps (megacore row sharding)
    # with a ragged last block.
    n_cuts3 = 300
    obs3 = jax.random.normal(k_obs3, (n_cuts3, feature_size), jnp.float32)
    scores_multi = score_policy_forward(obs3, params_hidden)
    jax.block_until_ready(scores_multi)

    # Verify against a pure-JAX reference of the torch semantics.
    ref_default = reference_mlp(obs, params_default)
    ref_hidden = reference_mlp(obs, params_hidden)
    ref_deep = reference_mlp(obs2, params_deep)
    ref_multi = reference_mlp(obs3, params_hidden)
    assert scores_default.shape == (n_cuts, out_size)
    assert scores_hidden.shape == (n_cuts, out_size)
    assert scores_deep.shape == (n_cuts2, out_size)
    assert scores_multi.shape == (n_cuts3, out_size)
    assert jnp.allclose(scores_default, ref_default, atol=2e-5, rtol=2e-5)
    assert jnp.allclose(scores_hidden, ref_hidden, atol=2e-5, rtol=2e-5)
    assert jnp.allclose(scores_deep, ref_deep, atol=2e-5, rtol=2e-5)
    assert jnp.allclose(scores_multi, ref_multi, atol=2e-5, rtol=2e-5)

    print("KERNEL_OK")
</pallas_src>

<mosaic_0001>
module attributes {stable_mosaic.version = 11 : i64} {
  func.func @kernel(%arg0: i32, %arg1: memref<64x13xf32, #tpu.memory_space<vmem>>, %arg2: memref<13x1xf32, #tpu.memory_space<vmem>>, %arg3: memref<1x1xf32, #tpu.memory_space<vmem>>, %arg4: memref<1x1x64xf32, #tpu.memory_space<vmem>>) attributes {dimension_semantics = [#tpu.dimension_semantics<parallel>], iteration_bounds = array<i64: 1>, scalar_prefetch = 0 : i64, scratch_operands = 0 : i64, tpu.core_type = #tpu.core_type<tc>, window_params = [{transform_indices = @transform_0, window_bounds = array<i64: 64, 13>}, {pipeline_mode = #tpu.pipeline_mode<synchronous>, transform_indices = @transform_1, window_bounds = array<i64: 13, 1>}, {pipeline_mode = #tpu.pipeline_mode<synchronous>, transform_indices = @transform_2, window_bounds = array<i64: 1, 1>}, {transform_indices = @transform_3, window_bounds = array<i64: 1, 1, 64>}]} {
    %c0 = arith.constant 0 : index
    %c0_0 = arith.constant 0 : index
    %0 = vector.load %arg1[%c0, %c0_0] : memref<64x13xf32, #tpu.memory_space<vmem>>, vector<64x13xf32>
    %c0_1 = arith.constant 0 : index
    %c0_2 = arith.constant 0 : index
    %1 = vector.load %arg2[%c0_1, %c0_2] : memref<13x1xf32, #tpu.memory_space<vmem>>, vector<13x1xf32>
    %c0_3 = arith.constant 0 : index
    %c0_4 = arith.constant 0 : index
    %2 = vector.load %arg3[%c0_3, %c0_4] : memref<1x1xf32, #tpu.memory_space<vmem>>, vector<1x1xf32>
    %cst = arith.constant dense<0.000000e+00> : vector<1x64xf32>
    %3 = tpu.matmul %1, %0, %cst {dimension_numbers = #tpu.dot_dimension_numbers<[0], [1], [1], [0], [0, 1, 1, 0], [], []>} : vector<13x1xf32>, vector<64x13xf32>, vector<1x64xf32> -> vector<1x64xf32>
    %4 = vector.broadcast %2 : vector<1x1xf32> to vector<1x64xf32>
    %5 = arith.addf %3, %4 : vector<1x64xf32>
    %c0_5 = arith.constant 0 : index
    %c0_6 = arith.constant 0 : index
    %c0_7 = arith.constant 0 : index
    %6 = vector.load %arg4[%c0_5, %c0_6, %c0_7] : memref<1x1x64xf32, #tpu.memory_space<vmem>>, vector<1x1x64xf32>
    %7 = vector.shape_cast %6 : vector<1x1x64xf32> to vector<1x64xf32>
    %8 = vector.shape_cast %5 : vector<1x64xf32> to vector<1x1x64xf32>
    tpu.vector_store %arg4[%c0_5, %c0_6, %c0_7], %8 {strides = array<i32>} : memref<1x1x64xf32, #tpu.memory_space<vmem>>, vector<1x1x64xf32>,
    return
  }
  func.func @transform_0(%arg0: i32) -> (i32, i32) {
    %c0_i32 = arith.constant 0 : i32
    %c0_i32_0 = arith.constant 0 : i32
    return %arg0, %c0_i32 : i32, i32
  }
  func.func @transform_1(%arg0: i32) -> (i32, i32) {
    %c0_i32 = arith.constant 0 : i32
    %c0_i32_0 = arith.constant 0 : i32
    %c0_i32_1 = arith.constant 0 : i32
    return %c0_i32, %c0_i32_0 : i32, i32
  }
  func.func @transform_2(%arg0: i32) -> (i32, i32) {
    %c0_i32 = arith.constant 0 : i32
    %c0_i32_0 = arith.constant 0 : i32
    %c0_i32_1 = arith.constant 0 : i32
    return %c0_i32, %c0_i32_0 : i32, i32
  }
  func.func @transform_3(%arg0: i32) -> (i32, i32, i32) {
    %c0_i32 = arith.constant 0 : i32
    %c0_i32_0 = arith.constant 0 : i32
    %c0_i32_1 = arith.constant 0 : i32
    return %arg0, %c0_i32, %c0_i32_0 : i32, i32, i32
  }
}

</mosaic_0001>

<bundles_post_ra>
// kernel: tpu_custom_call.1
= control target key start
LH: loop header
LB: loop body
LE: loop exit
PB: predicated region body
PF: predicated region fallthrough
CT: control target
= control target key end

     0   :  { %s239_s0 = inlined_call_operand.vmem [shape: f32[64,13], index: 0, kind: input, shape index: {}]   ;;  %s240_s1 = inlined_call_operand.vmem [shape: f32[13,1], index: 1, kind: input, shape index: {}]   ;;  %s241_s2 = inlined_call_operand.<no memory space> [shape: f32[1,1], index: 2, kind: input, shape index: {}]   ;;  %s242_s3 = inlined_call_operand.hbm [shape: f32[1,1,64], index: 3, kind: output, shape index: {}]  }
   0x1   :  { %v8_v0 = vstv %s241_s2 }
   0x2   :  { %9 = vst [vmem:[#allocation2] sm:$0x1] %v8_v0 }
   0x3   :  { %v25_v1 = vld [vmem:[%s240_s1] sm:$0xff]  ;;  %v24_v2 = vld [vmem:[%s239_s0 + $0x38] sm:$0xff]  ;;  %vm66_vm0 = vcmask 105472   ;;  %v23_v3 = vld [vmem:[%s239_s0 + $0x30] sm:$0xff] }
   0x4   :  { %34 = vxpose.xlu0.b32.start [1/2] (short) (narrow) %v25_v1, 8  ;;  %132 = vmatpush.xpose.msk.msra.mxu0 %vm66_vm0, %v24_v2 }
   0x5   :  { %10 = vsyncpa [#allocation4], 0  ;;  %v26_v4 = vld [vmem:[%s240_s1 + $0x8] sm:$0x1f]  ;;  %v21_v6 = vld [vmem:[%s239_s0 + $0x20] sm:$0xff]  ;;  %v172_v12 = vmov 0  }
   0x6   :  { %v22_v5 = vld [vmem:[%s239_s0 + $0x28] sm:$0xff]  ;;  %v20_v7 = vld [vmem:[%s239_s0 + $0x18] sm:$0xff]  ;;  %v19_v8 = vld [vmem:[%s239_s0 + $0x10] sm:$0xff]  ;;  %144 = vset.pattern.permute.xlu1 %v172_v12  ;;  %s173_s5 = smov [#allocation3]   ;;  %s123_s9 = sshll.u32 %s242_s3, 4  ;;  %vm114_vm1 = vcmask 516096   ;;  %s124_s9 = int_to_ptr.hbm [resolvable:$true] %s123_s9 }
   0x7   :  { %v18_v9 = vld [vmem:[%s239_s0 + $0x8] sm:$0xff]  ;;  %v17_v10 = vld [vmem:[%s239_s0] sm:$0xff]  ;;  %s121_s6 = sshll.u32 %s173_s5, 4  ;;  %s122_s6 = int_to_ptr.vmem [resolvable:$true] %s121_s6 }
   0x8   :  { %133 = vmatpush.xpose.msk.msra.mxu0 %vm66_vm0, %v23_v3 }
   0x9   :  { %v27_v11 = vld [vmem:[#allocation2] sm:$0x1] }
   0xa   :  { %30 = vperm.xlu1 %144, %v27_v11  }
   0xc   :  { %35 = vxpose.xlu0.b32.end [2/2] (short) (narrow) %v26_v4, 8  ;;  %134 = vmatpush.xpose.msk.msra.mxu0 %vm66_vm0, %v22_v5 }
  0x10   :  { %135 = vmatpush.xpose.msk.msra.mxu0 %vm66_vm0, %v21_v6 }
  0x14   :  { %136 = vmatpush.xpose.msk.msra.mxu0 %vm66_vm0, %v20_v7 }
  0x18   :  { %137 = vmatpush.xpose.msk.msra.mxu0 %vm66_vm0, %v19_v8 }
  0x1c   :  { %138 = vmatpush.xpose.msk.msra.mxu0 %vm66_vm0, %v18_v9 }
  0x20   :  { %139 = vmatpush.xpose.msk.msra.mxu0 %vm66_vm0, %v17_v10 }
  0x73   :  { %145 = vset.pattern.permute.xlu0 %v172_v12 }
  0x7c   :  { %v31_v14 = vpop.permute.xlu1 %30 }
  0x7d   :  { %v33_v15 = vperm.slane %v31_v14, 0 }
  0xa8   :  { %v50_v13 = vpop.trf.xlu0 }
  0xa9   :  { %140 = vmatmul.msk.f32.vlgmr.msra.gmra.mxu0 %vm66_vm0, %v50_v13 }
 0x126   :  { %v111_v16 = vpop.f32.mrf.mxu0 }
 0x127   :  { %v112_v17 = vadd.f32 %v111_v16, %v33_v15 }
 0x129   :  { %115 = vst.msk [vmem:[#allocation3] sm:$0x1] %vm114_vm1, %v112_v17 }
 0x12a   :  { %126 = dma.vmem_to_hbm [thread:$0]  %s122_s6, 16, %s124_s9, [#allocation4]  }
 0x12b   :  { %170 = dma.done.wait [#allocation4], 16  }
 0x12c   :  { %171 = vsyncadd [#allocation4], 4294967280 }
 0x12d   :  { %131 = vsyncpa [#allocation4], 1 }

</bundles_post_ra>
